<compile_context>
chip_gen: v5e
topology: v5e:2x2
jax: 0.10.0
libtpu: 0.0.40
codegen_flags: <defaults>
</compile_context>

<pallas_src>
import functools

import numpy as np
import jax
import jax.numpy as jnp
from jax.experimental import pallas as pl
from jax.experimental.pallas import tpu as pltpu


# ------------------------------------------------------------------ small helpers

def _pick_time_tile(total_t, bytes_per_col, budget_bytes):
    """Largest lane tile (multiple of 128, divisor of total_t) whose double-buffered
    logits working set fits the budget; falls back to a single full-extent tile."""
    for cand in (2048, 1024, 512, 256, 128):
        if total_t % cand == 0 and 2 * cand * bytes_per_col <= budget_bytes:
            return cand
    return total_t


def _logaddexp(a, b):
    mx = jnp.maximum(a, b)
    mn = jnp.minimum(a, b)
    return mx + jnp.log1p(jnp.exp(mn - mx))


def _shift_right_with_carry(x, carry):
    """prev[..., j] = x[..., j-1] for j>=1 ; prev[..., 0] = carry (previous tile's last col)."""
    return jnp.concatenate([carry[..., None], x[..., :-1]], axis=-1)


# ------------------------------------------------------------------ kernels

def _sim_kernel(feats_ref, simp_ref, carry_ref, *, sigma, t_tile):
    """Stage-invariant Gaussian similarity, tiled over Tf.
    simp[:, u] = exp(-||f[:, :, u] - f[:, :, u-1]|| / 2σ²) for u >= 1, simp[:, 0] = 0."""
    i = pl.program_id(0)
    f = feats_ref[...].astype(jnp.float32)                              # (N, Cf, tT)

    @pl.when(i == 0)
    def _():
        carry_ref[...] = f[:, :, 0]

    prev = _shift_right_with_carry(f, carry_ref[...])
    diff = f - prev
    dist = jnp.sqrt(jnp.sum(diff * diff, axis=1))                       # (N, tT)
    sim = jnp.exp(-dist / (2.0 * sigma * sigma))
    gcol = i * t_tile + jax.lax.broadcasted_iota(jnp.int32, sim.shape, 1)
    simp_ref[...] = jnp.where(gcol == 0, 0.0, sim)
    carry_ref[...] = f[:, :, f.shape[-1] - 1]


def _fused_kernel(x_ref, labels_ref, wyv_ref, gw_ref, masks_ref, by_ref, bx_ref,
                  out_ref,
                  m_ref, s_ref, xfirst_ref, xlast_ref, delta_ref, carry_ref,
                  ce_acc, gst_acc, bce_acc,
                  *, T, t_tile, thr2, pos_weight):
    p = pl.program_id(1)          # phase: 0 = CE + online time-LSE, 1 = GSTMSE + BCE + finalize
    t = pl.program_id(2)          # time tile
    n_t = pl.num_programs(2)

    @pl.when((p == 0) & (t == 0))
    def _init():
        m_ref[...] = jnp.full_like(m_ref, -1e30)
        s_ref[...] = jnp.zeros_like(s_ref)
        ce_acc[...] = jnp.zeros_like(ce_acc)
        gst_acc[...] = jnp.zeros_like(gst_acc)
        bce_acc[...] = jnp.zeros_like(bce_acc)

    @pl.when(p == 0)
    def _phase_lse_ce():
        x = x_ref[...].astype(jnp.float32)                              # (N, C, tT)
        _, C, tt = x.shape

        # -- weighted cross entropy over the class (sublane) axis, summed over time --
        mx = jnp.max(x, axis=1, keepdims=True)                          # (N, 1, tT)
        ec = jnp.exp(x - mx)
        lse_c = jnp.log(jnp.sum(ec, axis=1)) + mx[:, 0, :]              # (N, tT)
        c_iota = jax.lax.broadcasted_iota(jnp.int32, x.shape, 1)
        onehot = (labels_ref[...][:, None, :] == c_iota).astype(jnp.float32)
        picked = jnp.sum(onehot * x, axis=1)                            # (N, tT)
        ce_acc[...] += wyv_ref[...].astype(jnp.float32) * (lse_c - picked)

        # -- online (flash-style) LSE over the common time columns [1, T-2] --
        gcol = t * t_tile + jax.lax.broadcasted_iota(jnp.int32, (1, 1, tt), 2)
        common = (gcol >= 1) & (gcol <= T - 2)
        m_tile = jnp.max(jnp.where(common, x, -1e30), axis=2)           # (N, C)
        m_new = jnp.maximum(m_ref[...], m_tile)
        e_t = jnp.where(common, jnp.exp(x - m_new[:, :, None]), 0.0)
        s_ref[...] = s_ref[...] * jnp.exp(m_ref[...] - m_new) + jnp.sum(e_t, axis=2)
        m_ref[...] = m_new

        @pl.when(t == 0)
        def _():
            xfirst_ref[...] = x[:, :, 0]

        @pl.when(t == n_t - 1)
        def _():
            xlast_ref[...] = x[:, :, tt - 1]

    @pl.when(p == 1)
    def _phase_gst_bce():
        x = x_ref[...].astype(jnp.float32)                              # (N, C, tT)
        _, C, tt = x.shape

        @pl.when(t == 0)
        def _():
            # Robust slice log-sum-exps: common-set LSE plus the excluded endpoint,
            # combined with a two-term logaddexp (never subtracts exponentials).
            lse_common = m_ref[...] + jnp.log(s_ref[...])
            lse1 = _logaddexp(lse_common, xlast_ref[...])               # LSE over t in [1, T-1]
            lse0 = _logaddexp(lse_common, xfirst_ref[...])              # LSE over t in [0, T-2]
            delta_ref[...] = lse1 - lse0
            carry_ref[...] = x[:, :, 0]

        prev = _shift_right_with_carry(x, carry_ref[...])
        d = (x - prev) - delta_ref[...][:, :, None]                     # (N, C, tT)
        mse = jnp.minimum(d * d, thr2)                                  # clamp(min=0) is implicit
        gw = gw_ref[...].astype(jnp.float32)                            # sim * mask, column 0 == 0
        gst_acc[...] += jnp.sum(mse * gw[:, None, :], axis=2)           # (N, C)
        carry_ref[...] = x[:, :, tt - 1]

        # -- boundary BCE-with-logits (pos_weight), accumulated over time --
        mk = masks_ref[...].astype(jnp.float32)
        xb = bx_ref[...].astype(jnp.float32) * mk
        yb = by_ref[...].astype(jnp.float32)                            # boundary gt, pre-masked
        sp = jnp.maximum(-xb, 0.0) + jnp.log1p(jnp.exp(-jnp.abs(xb)))   # stable softplus(-x)
        bce_acc[...] += pos_weight * yb * sp + (1.0 - yb) * (xb + sp)

        @pl.when(t == n_t - 1)
        def _finalize():
            ce_n = jnp.sum(ce_acc[...], axis=-1, keepdims=True)                     # (N, 1)
            gst_n = jnp.sum(gst_acc[...], axis=-1, keepdims=True) / (C * (T - 1))   # (N, 1)
            bce_n = jnp.sum(bce_acc[...], axis=-1, keepdims=True) / T               # (N, 1)
            out_ref[:, 0:1] = ce_n
            out_ref[:, 1:2] = gst_n
            out_ref[:, 2:3] = bce_n


# ------------------------------------------------------------------ pallas wrappers

def _make_sim_call(N, Cf, Tf, *, sigma):
    t_tile = _pick_time_tile(Tf, bytes_per_col=4 * N * Cf, budget_bytes=8 << 20)
    kernel = functools.partial(_sim_kernel, sigma=sigma, t_tile=t_tile)
    return pl.pallas_call(
        kernel,
        grid=(Tf // t_tile,),
        in_specs=[pl.BlockSpec((N, Cf, t_tile), lambda i: (0, 0, i))],
        out_specs=pl.BlockSpec((N, t_tile), lambda i: (0, i)),
        out_shape=jax.ShapeDtypeStruct((N, Tf), jnp.float32),
        scratch_shapes=[pltpu.VMEM((N, Cf), jnp.float32)],               # carried previous column
        compiler_params=pltpu.CompilerParams(
            dimension_semantics=("arbitrary",),                          # carry dependence
            vmem_limit_bytes=32 * 1024 * 1024),
        cost_estimate=pl.CostEstimate(
            flops=4 * N * Cf * Tf,
            transcendentals=2 * N * Tf,
            bytes_accessed=4 * (N * Cf * Tf + N * Tf)),
    )


def _make_fused_call(S, N, C, T, *, thr2, pos_weight):
    t_tile = _pick_time_tile(T, bytes_per_col=4 * N * C, budget_bytes=16 << 20)
    n_t = T // t_tile
    kernel = functools.partial(_fused_kernel, T=T, t_tile=t_tile,
                               thr2=thr2, pos_weight=pos_weight)
    cost = pl.CostEstimate(
        flops=16 * S * N * C * T + 24 * S * N * T,
        transcendentals=2 * S * N * C * T + 3 * S * N * T,
        bytes_accessed=2 * 4 * S * N * C * T + 4 * 2 * (6 * S * N * T) + 4 * 3 * S * N,
    )
    return pl.pallas_call(
        kernel,
        grid=(S, 2, n_t),
        in_specs=[
            pl.BlockSpec((None, N, C, t_tile), lambda s, p, t: (s, 0, 0, t)),    # cls logits
            pl.BlockSpec((N, t_tile), lambda s, p, t: (0, t)),                   # labels (int32)
            pl.BlockSpec((N, t_tile), lambda s, p, t: (0, t)),                   # cw[label]*valid
            pl.BlockSpec((N, t_tile), lambda s, p, t: (0, t)),                   # sim * mask
            pl.BlockSpec((N, t_tile), lambda s, p, t: (0, t)),                   # masks
            pl.BlockSpec((N, t_tile), lambda s, p, t: (0, t)),                   # boundary gt * mask
            pl.BlockSpec((None, N, None, t_tile), lambda s, p, t: (s, 0, 0, t)), # boundary logits
        ],
        out_specs=pl.BlockSpec((None, N, 3), lambda s, p, t: (s, 0, 0)),         # packed results
        out_shape=jax.ShapeDtypeStruct((S, N, 3), jnp.float32),
        scratch_shapes=[
            pltpu.VMEM((N, C), jnp.float32),        # running max (common time columns)
            pltpu.VMEM((N, C), jnp.float32),        # running exp-sum
            pltpu.VMEM((N, C), jnp.float32),        # x[:, :, 0]
            pltpu.VMEM((N, C), jnp.float32),        # x[:, :, T-1]
            pltpu.VMEM((N, C), jnp.float32),        # delta = lse1 - lse0
            pltpu.VMEM((N, C), jnp.float32),        # previous tile's last column (phase 1)
            pltpu.VMEM((N, t_tile), jnp.float32),   # CE accumulator
            pltpu.VMEM((N, C), jnp.float32),        # GSTMSE accumulator
            pltpu.VMEM((N, t_tile), jnp.float32),   # BCE accumulator
        ],
        # Stages are independent (outputs indexed by s only) → "parallel" lets megacore
        # split the stage axis; the phase/time axes carry the accumulators → "arbitrary".
        compiler_params=pltpu.CompilerParams(
            dimension_semantics=("parallel", "arbitrary", "arbitrary"),
            vmem_limit_bytes=48 * 1024 * 1024),
        cost_estimate=cost,
    )


# ------------------------------------------------------------------ ASRFLoss forward (glue + kernels)

def get_boundary(labels):
    diff = (labels[:, 1:] != labels[:, :-1])
    first = jnp.ones((labels.shape[0], 1), dtype=bool)
    return jnp.concatenate([first, diff], axis=1).astype(jnp.float32)


def asrf_loss_pallas(output_cls, outputs_boundary, features, masks, labels,
                     precise_sliding_num, *, class_weight, pos_weight,
                     sample_rate=1, boundary_loss_weight=0.1, threshold=4.0,
                     ignore_index=-100, ce_weight=1.0, gstmse_weight=1.0, sigma=1.0):
    # NOTE: ce_weight is accepted but unused, exactly like the original PyTorch module
    # (the CrossEntropy branch of ActionSegmentationLoss never multiplies by its weight).
    eps = 1e-10
    S, N, C, T = output_cls.shape
    Cf, Tf = features.shape[1], features.shape[2]
    psn = precise_sliding_num.astype(jnp.float32)
    labels = labels.astype(jnp.int32)
    masks_f = masks.astype(jnp.float32)

    boundary = get_boundary(labels)

    # Stage-invariant per-timestep CE weight (hoisted out of the per-stage loop).
    safe = jnp.clip(labels, 0, C - 1)
    wy_valid = jnp.where(labels != ignore_index,
                         class_weight.astype(jnp.float32)[safe], 0.0)

    # Stage-invariant Gaussian similarity, computed ONCE on the raw features.
    simp = _make_sim_call(N, Cf, Tf, sigma=sigma)(features)              # (N, Tf)

    # Nearest-neighbour upsample of the 1-channel similarity (instead of repeating the
    # Cf-channel features): within a repeated block the feature diff is 0 → similarity 1.
    if sample_rate == 1:
        simp_up = simp[:, :T]
    else:
        u = jnp.arange(T)
        cross = (u // sample_rate) != ((u - 1) // sample_rate)           # True at u == 0 too
        simp_up = jnp.where(cross[None, :],
                            simp[:, jnp.clip(u // sample_rate, 0, Tf - 1)], 1.0)
    gw = simp_up * masks_f                                               # GSTMSE per-column weight

    fused = _make_fused_call(S, N, C, T, thr2=float(threshold) ** 2,
                             pos_weight=float(pos_weight))
    packed = fused(output_cls, labels, wy_valid, gw, masks_f,
                   boundary * masks_f, outputs_boundary)                 # (S, N, 3)
    ce_sum = packed[..., 0]       # (S, N)  sum_t weighted CE
    gst_mean = packed[..., 1]     # (S, N)  mean_{c,t} clipped similarity-weighted TMSE
    bce_mean = packed[..., 2]     # (S, N)  mean_t boundary BCE

    # The original PyTorch hard-codes `labels != -100` for this normaliser (independent of
    # ignore_index); reproduce that exactly.
    valid_count = jnp.sum(labels != -100).astype(jnp.float32)
    ce_terms = jnp.sum(ce_sum / (psn[None, :] + eps), axis=-1) / (valid_count + eps)   # (S,)
    gst_terms = gstmse_weight * jnp.mean(gst_mean / (psn[None, :] + eps), axis=-1)     # (S,)
    loss = jnp.sum(ce_terms + gst_terms) / S

    brl = jnp.sum(bce_mean, axis=-1) * jnp.mean(1.0 / (psn + eps)) / N                 # (S,)
    loss = loss + jnp.sum(boundary_loss_weight * brl) / S
    return loss


# ------------------------------------------------------------------ pure-JAX reference (for checking)

def asrf_loss_reference(output_cls, outputs_boundary, features, masks, labels,
                        precise_sliding_num, *, class_weight, pos_weight,
                        sample_rate=1, boundary_loss_weight=0.1, threshold=4.0,
                        ignore_index=-100, ce_weight=1.0, gstmse_weight=1.0, sigma=1.0):
    eps = 1e-10
    S, N, C, T = output_cls.shape
    psn = precise_sliding_num.astype(jnp.float32)
    boundary = get_boundary(labels)
    sim_up = jnp.repeat(features, sample_rate, axis=-1)[:, :, :T]

    cls_loss = 0.0
    for s in range(S):
        pred = output_cls[s].astype(jnp.float32)                      # (N,C,T)
        logp = jax.nn.log_softmax(pred, axis=1)
        oh = jax.nn.one_hot(labels, C, axis=1, dtype=jnp.float32)
        nll = -jnp.sum(oh * logp, axis=1)
        wy = jnp.sum(oh * class_weight[None, :, None], axis=1)
        valid = (labels != ignore_index)
        ce = jnp.where(valid, wy * nll, 0.0)
        ce_term = jnp.sum(jnp.sum(ce, axis=-1) / (psn + eps)) / (jnp.sum(labels != -100) + eps)

        diff = sim_up[:, :, 1:] - sim_up[:, :, :-1]
        similarity = jnp.exp(-jnp.linalg.norm(diff, axis=1) / (2.0 * sigma ** 2))
        lsm1 = jax.nn.log_softmax(pred[:, :, 1:], axis=2)
        lsm0 = jax.nn.log_softmax(pred[:, :, :-1], axis=2)
        mse = jnp.clip((lsm1 - lsm0) ** 2, 0.0, threshold ** 2) * masks[:, None, 1:]
        per_c = jnp.mean(similarity[:, None, :] * mse, axis=-1)
        gst = jnp.mean(per_c, axis=-1)
        gst_term = jnp.mean(gst / (psn + eps))
        cls_loss = cls_loss + ce_term + gstmse_weight * gst_term
    loss = cls_loss / S

    bl = 0.0
    for s in range(S):
        x = outputs_boundary[s, :, 0, :].astype(jnp.float32) * masks
        y = boundary * masks
        sp = jnp.maximum(-x, 0.0) + jnp.log1p(jnp.exp(-jnp.abs(x)))
        bce = pos_weight * y * sp + (1.0 - y) * (x + sp)
        brl = jnp.sum(jnp.mean(bce, axis=-1)) * jnp.mean(1.0 / (psn + eps)) / N
        bl = bl + boundary_loss_weight * brl
    return loss + bl / S


# ------------------------------------------------------------------ main

if __name__ == "__main__":
    S, N, C, Cf, T = 2, 2, 4, 8, 16   # stages, batch, classes, feature channels, time

    key = jax.random.PRNGKey(0)
    k1, k2, k3, k4 = jax.random.split(key, 4)

    output_cls = jax.random.normal(k1, (S, N, C, T), dtype=jnp.float32)
    outputs_boundary = jax.random.normal(k2, (S, N, 1, T), dtype=jnp.float32)
    features = jax.random.normal(k3, (N, Cf, T), dtype=jnp.float32)
    labels = jax.random.randint(k4, (N, T), 0, C, dtype=jnp.int32)      # all valid (no -100)
    masks = jnp.ones((N, T), dtype=jnp.float32).at[1, T - 4:].set(0.0)  # some padded timesteps
    precise_sliding_num = jnp.array([1.0, 2.0], dtype=jnp.float32)

    # deterministic "parameters" of the loss module
    class_weight = jnp.linspace(0.5, 1.5, C, dtype=jnp.float32)
    pos_weight = 2.0

    kwargs = dict(class_weight=class_weight, pos_weight=pos_weight,
                  sample_rate=1, boundary_loss_weight=0.1, threshold=4.0,
                  ignore_index=-100, ce_weight=1.0, gstmse_weight=1.0, sigma=1.0)

    loss = asrf_loss_pallas(output_cls, outputs_boundary, features, masks,
                            labels, precise_sliding_num, **kwargs)
    loss = jax.block_until_ready(loss)

    ref = asrf_loss_reference(output_cls, outputs_boundary, features, masks,
                              labels, precise_sliding_num, **kwargs)
    ref = jax.block_until_ready(ref)

    np.testing.assert_allclose(np.asarray(loss), np.asarray(ref), rtol=5e-4, atol=1e-5)
    print("KERNEL_OK")
</pallas_src>

<mosaic_0001>
module attributes {stable_mosaic.version = 11 : i64} {
  func.func @_sim_kernel(%arg0: i32, %arg1: memref<2x8x16xf32, #tpu.memory_space<vmem>>, %arg2: memref<2x16xf32, #tpu.memory_space<vmem>>, %arg3: memref<2x8xf32, #tpu.memory_space<vmem>>) attributes {dimension_semantics = [#tpu.dimension_semantics<arbitrary>], iteration_bounds = array<i64: 1>, scalar_prefetch = 0 : i64, scratch_operands = 1 : i64, tpu.core_type = #tpu.core_type<tc>, window_params = [{transform_indices = @transform_0, window_bounds = array<i64: 2, 8, 16>}, {transform_indices = @transform_1, window_bounds = array<i64: 2, 16>}]} {
    %c0 = arith.constant 0 : index
    %c0_0 = arith.constant 0 : index
    %c0_1 = arith.constant 0 : index
    %0 = vector.load %arg1[%c0, %c0_0, %c0_1] : memref<2x8x16xf32, #tpu.memory_space<vmem>>, vector<2x8x16xf32>
    %c0_i32 = arith.constant 0 : i32
    %1 = arith.cmpi eq, %arg0, %c0_i32 : i32
    %2 = arith.extui %1 : i1 to i32
    %c0_i32_2 = arith.constant 0 : i32
    %3 = arith.cmpi ne, %2, %c0_i32_2 : i32
    scf.if %3 {
      %29 = vector.extract_strided_slice %0 {offsets = [0, 0, 0], sizes = [2, 8, 1], strides = [1, 1, 1]} : vector<2x8x16xf32> to vector<2x8x1xf32>
      %30 = vector.shape_cast %29 : vector<2x8x1xf32> to vector<2x8xf32>
      %c0_13 = arith.constant 0 : index
      %c0_14 = arith.constant 0 : index
      %31 = vector.load %arg3[%c0_13, %c0_14] : memref<2x8xf32, #tpu.memory_space<vmem>>, vector<2x8xf32>
      tpu.vector_store %arg3[%c0_13, %c0_14], %30 {strides = array<i32>} : memref<2x8xf32, #tpu.memory_space<vmem>>, vector<2x8xf32>,
    } else {
    }
    %c0_3 = arith.constant 0 : index
    %c0_4 = arith.constant 0 : index
    %4 = vector.load %arg3[%c0_3, %c0_4] : memref<2x8xf32, #tpu.memory_space<vmem>>, vector<2x8xf32>
    %5 = vector.shape_cast %4 : vector<2x8xf32> to vector<2x8x1xf32>
    %6 = vector.extract_strided_slice %0 {offsets = [0, 0, 0], sizes = [2, 8, 15], strides = [1, 1, 1]} : vector<2x8x16xf32> to vector<2x8x15xf32>
    %7 = tpu.concatenate %5, %6 in 2 : vector<2x8x1xf32>, vector<2x8x15xf32> -> vector<2x8x16xf32>
    %8 = arith.subf %0, %7 : vector<2x8x16xf32>
    %9 = arith.mulf %8, %8 : vector<2x8x16xf32>
    %cst = arith.constant dense<0.000000e+00> : vector<2x16xf32>
    %10 = vector.multi_reduction <add>, %9, %cst [1] : vector<2x8x16xf32> to vector<2x16xf32>
    %11 = math.sqrt %10 : vector<2x16xf32>
    %cst_5 = arith.constant 0.000000e+00 : f32
    %12 = vector.broadcast %cst_5 : f32 to vector<2x16xf32>
    %13 = arith.subf %12, %11 : vector<2x16xf32>
    %cst_6 = arith.constant 2.000000e+00 : f32
    %14 = vector.broadcast %cst_6 : f32 to vector<2x16xf32>
    %15 = arith.divf %13, %14 : vector<2x16xf32>
    %16 = math.exp %15 : vector<2x16xf32>
    %c16_i32 = arith.constant 16 : i32
    %17 = arith.muli %arg0, %c16_i32 : i32
    %18 = tpu.iota {dimensions = array<i32: 1>} : vector<2x16xi32>
    %19 = vector.broadcast %17 : i32 to vector<2x16xi32>
    %20 = arith.addi %19, %18 : vector<2x16xi32>
    %c0_i32_7 = arith.constant 0 : i32
    %21 = vector.broadcast %c0_i32_7 : i32 to vector<2x16xi32>
    %22 = arith.cmpi eq, %20, %21 : vector<2x16xi32>
    %cst_8 = arith.constant 0.000000e+00 : f32
    %23 = vector.broadcast %cst_8 : f32 to vector<2x16xf32>
    %24 = arith.select %22, %23, %16 : vector<2x16xi1>, vector<2x16xf32>
    %c0_9 = arith.constant 0 : index
    %c0_10 = arith.constant 0 : index
    %25 = vector.load %arg2[%c0_9, %c0_10] : memref<2x16xf32, #tpu.memory_space<vmem>>, vector<2x16xf32>
    tpu.vector_store %arg2[%c0_9, %c0_10], %24 {strides = array<i32>} : memref<2x16xf32, #tpu.memory_space<vmem>>, vector<2x16xf32>,
    %26 = vector.extract_strided_slice %0 {offsets = [0, 0, 15], sizes = [2, 8, 1], strides = [1, 1, 1]} : vector<2x8x16xf32> to vector<2x8x1xf32>
    %27 = vector.shape_cast %26 : vector<2x8x1xf32> to vector<2x8xf32>
    %c0_11 = arith.constant 0 : index
    %c0_12 = arith.constant 0 : index
    %28 = vector.load %arg3[%c0_11, %c0_12] : memref<2x8xf32, #tpu.memory_space<vmem>>, vector<2x8xf32>
    tpu.vector_store %arg3[%c0_11, %c0_12], %27 {strides = array<i32>} : memref<2x8xf32, #tpu.memory_space<vmem>>, vector<2x8xf32>,
    return
  }
  func.func @transform_0(%arg0: i32) -> (i32, i32, i32) {
    %c0_i32 = arith.constant 0 : i32
    %c0_i32_0 = arith.constant 0 : i32
    %c0_i32_1 = arith.constant 0 : i32
    return %c0_i32, %c0_i32_0, %arg0 : i32, i32, i32
  }
  func.func @transform_1(%arg0: i32) -> (i32, i32) {
    %c0_i32 = arith.constant 0 : i32
    %c0_i32_0 = arith.constant 0 : i32
    return %c0_i32, %arg0 : i32, i32
  }
}

</mosaic_0001>

<bundles_post_ra>
// kernel: tpu_custom_call.1
= control target key start
LH: loop header
LB: loop body
LE: loop exit
PB: predicated region body
PF: predicated region fallthrough
CT: control target
= control target key end

     0   :  { %6 = vsyncpa [#allocation4], 0  ;;  %s285_s0 = inlined_call_operand.hbm [shape: f32[2,8,16], index: 0, kind: input, shape index: {}]   ;;  %s286_s1 = inlined_call_operand.hbm [shape: f32[2,16], index: 1, kind: output, shape index: {}]  }
   0x1   :  { %7 = vsyncpa [#allocation5], 0  ;;  %s12_s8 = sshll.u32 %s285_s0, 4  ;;  %s249_s9 = smov [#allocation3]   ;;  %s13_s8 = int_to_ptr.hbm [resolvable:$true] %s12_s8 }
   0x2   :  { %s14_s10 = sshll.u32 %s249_s9, 4  ;;  %s250_s11 = smov 128   ;;  %s15_s10 = int_to_ptr.vmem [resolvable:$true] %s14_s10 }
   0x3   :  { %s251_s12 = smov 8  }
   0x4   :  { %20 = dma.hbm_to_vmem [thread:$0]  %s13_s8, 256, %s15_s10, [#allocation4], %s250_s11, %s250_s11, %s251_s12  }
   0x5   :  { %245 = dma.done.wait [#allocation4], 256  }
   0x6   :  { %246 = vsyncadd [#allocation4], 4294967040  ;;  %v252_v0 = vmov 0   ;;  %v25_v1 = vld [vmem:[#allocation3] sm:$0xff]  ;;  %v26_v2 = vld [vmem:[#allocation3 + $0x8] sm:$0xff]  ;;  %s253_s13 = smov 1   ;;  %v39_v3 = vlaneseq }
   0x7   :  { %183 = vset.pattern.permute.xlu0 %v252_v0  ;;  %65 = vrot.lane.b32.xlu2 %v25_v1, %s253_s13  ;;  %v254_v5 = vmov 15   ;;  %vm43_vm0 = vcmask 1041409   ;;  %vm46_vm1 = vcmask 58368   ;;  %vm71_vm2 = vcmask 7168   ;;  %s256_s0 = smov [#allocation6]   ;;  %s165_s17 = sshll.u32 %s286_s1, 4  ;;  %s166_s17 = int_to_ptr.hbm [resolvable:$true] %s165_s17 }
   0x8   :  { %34 = vperm.xlu0 %183, %v25_v1   ;;  %v51_v4 = vshrl.u32 %v39_v3, 7  ;;  %v270_v7 = vand.u32 127, %v39_v3  ;;  %vm78_vm3 = vcmask 130048   ;;  %v255_v38 = vmov 2.0   ;;  %s163_s14 = sshll.u32 %s256_s0, 4  ;;  %s164_s14 = int_to_ptr.vmem [resolvable:$true] %s163_s14 }
   0x9   :  { %187 = vrcp.f32 %v255_v38  ;;  %vm144_vm10 = vcmask 123904  }
   0xa   :  { %184 = vset.pattern.permute.xlu1 %v51_v4  ;;  %vm137_vm9 = vcmp.eq.s32.totalorder %v270_v7, 0 }
   0xf   :  { %67 = vrot.lane.b32.xlu2 %v26_v2, %s253_s13  ;;  %v188_v43 = vpop.eup %187 }
  0x10   :  { %37 = vperm.xlu0 %183, %v26_v2   ;;  %v120_v48 = vmul.f32 2.0, %v188_v43  ;;  %vm124_vm6 = vweird.f32 %v188_v43 }
  0x12   :  { %v121_v51 = vsub.f32 1.0, %v120_v48 }
  0x14   :  { %v122_v56 = vmul.f32 %v188_v43, %v121_v51 }
  0x16   :  { %v123_v62 = vadd.f32 %v188_v43, %v122_v56 }
  0x18   :  { %185 = vset.pattern.permute.xlu0 %v254_v5  ;;  %v125_v3 = vsel %vm124_vm6, %v188_v43, %v123_v62 }
  0x19   :  { %147 = vperm.xlu0 %185, %v25_v1  }
  0x61   :  { %v66_v15 = vpop.permute.xlu2 %65 }
  0x69   :  { %v68_v21 = vpop.permute.xlu2 %67 }
  0x7a   :  { %v35_v6 = vpop.permute.xlu0 %34 }
  0x7b   :  { %v41_v9 = vperm.slane %v35_v6, %v270_v7 }
  0x82   :  { %v38_v8 = vpop.permute.xlu0 %37 }
  0x83   :  { %v42_v10 = vperm.slane %v38_v8, %v270_v7 }
  0x85   :  { %v44_v11 = vsel %vm43_vm0, %v42_v10, %v41_v9 }
  0x86   :  { %47 = vst.msk [vmem:[#allocation2] sm:$0x3] %vm46_vm1, %v44_v11 }
  0x8b   :  { %v148_v30 = vpop.permute.xlu0 %147 }
  0x8c   :  { %v152_v34 = vperm.slane %v148_v30, %v270_v7 }
  0x8d   :  { %v48_v12 = vld [vmem:[#allocation2] sm:$0x3] }
  0x8e   :  { %v49_v13 = vperm.slane %v48_v12, 0  ;;  %v56_v14 = vperm.slane %v48_v12, 1 }
  0x90   :  { %54 = vperm.xlu1 %184, %v49_v13  }
  0x98   :  { %61 = vperm.xlu1 %184, %v56_v14  }
  0xa0   :  { %186 = vset.pattern.permute.xlu1 %v254_v5 }
  0xa1   :  { %150 = vperm.xlu1 %186, %v26_v2  }
 0x102   :  { %v55_v16 = vpop.permute.xlu1 %54 }
 0x103   :  { %v72_v17 = vsel %vm71_vm2, %v55_v16, %v66_v15 }
 0x104   :  { %v74_v18 = vsub.f32 %v25_v1, %v72_v17 }
 0x106   :  { %v76_v19 = vmul.f32 %v74_v18, %v74_v18 }
 0x108   :  { %v79_v20 = vsel %vm78_vm3, %v76_v19, 0.0 }
 0x109   :  { %v80_v22 = vrot.slane %v79_v20, 4 }
 0x10a   :  { %v62_v23 = vpop.permute.xlu1 %61 }
 0x10b   :  { %v81_v24 = vadd.f32 %v80_v22, %v79_v20  ;;  %v73_v25 = vsel %vm71_vm2, %v62_v23, %v68_v21 }
 0x10c   :  { %v75_v26 = vsub.f32 %v26_v2, %v73_v25 }
 0x10d   :  { %v82_v27 = vrot.slane %v81_v24, 2 }
 0x10e   :  { %v77_v28 = vmul.f32 %v75_v26, %v75_v26 }
 0x10f   :  { %v83_v29 = vadd.f32 %v82_v27, %v81_v24 }
 0x110   :  { %v86_v31 = vsel %vm78_vm3, %v77_v28, 0.0 }
 0x111   :  { %v84_v32 = vrot.slane %v83_v29, 1  ;;  %v87_v33 = vrot.slane %v86_v31, 4 }
 0x113   :  { %v85_v35 = vadd.f32 %v84_v32, %v83_v29  ;;  %v88_v36 = vadd.f32 %v87_v33, %v86_v31  ;;  %v151_v37 = vpop.permute.xlu1 %150 }
 0x114   :  { %v153_v39 = vperm.slane %v151_v37, %v270_v7 }
 0x115   :  { %189 = vrsqrt.f32 %v85_v35  ;;  %v89_v40 = vrot.slane %v88_v36, 2  ;;  %vm100_vm4 = vcmp.eq.f32.partialorder %v85_v35, inf  ;;  %v103_v59 = vand.u32 2147483648, %v85_v35 }
 0x116   :  { %v154_v41 = vsel %vm43_vm0, %v153_v39, %v152_v34  ;;  %vm102_vm5 = vcmp.eq.f32.partialorder %v85_v35, 0.0 }
 0x117   :  { %v90_v42 = vadd.f32 %v89_v40, %v88_v36  ;;  %157 = vst.msk [vmem:[#allocation2] sm:$0x3] %vm46_vm1, %v154_v41 }
 0x119   :  { %v91_v44 = vrot.slane %v90_v42, 1 }
 0x11b   :  { %v190_v45 = vpop.eup %189  ;;  %v92_v46 = vadd.f32 %v91_v44, %v90_v42 }
 0x11c   :  { %v94_v47 = vmul.f32 %v190_v45, %v85_v35 }
 0x11d   :  { %191 = vrsqrt.f32 %v92_v46  ;;  %vm112_vm7 = vcmp.eq.f32.partialorder %v92_v46, inf  ;;  %v115_v5 = vand.u32 2147483648, %v92_v46  ;;  %vm114_vm8 = vcmp.eq.f32.partialorder %v92_v46, 0.0 }
 0x11e   :  { %v95_v49 = vmul.f32 %v190_v45, %v94_v47 }
 0x120   :  { %v96_v50 = vmul.f32 0.5, %v95_v49 }
 0x122   :  { %v97_v52 = vsub.f32 1.5, %v96_v50 }
 0x123   :  { %v192_v53 = vpop.eup %191 }
 0x124   :  { %v106_v54 = vmul.f32 %v192_v53, %v92_v46  ;;  %v98_v55 = vmul.f32 %v190_v45, %v97_v52 }
 0x126   :  { %v107_v57 = vmul.f32 %v192_v53, %v106_v54  ;;  %v99_v58 = vmul.f32 %v98_v55, %v85_v35 }
 0x128   :  { %v101_v60 = vsel %vm100_vm4, %v85_v35, %v99_v58  ;;  %v108_v61 = vmul.f32 0.5, %v107_v57 }
 0x129   :  { %v104_v63 = vsel %vm102_vm5, %v103_v59, %v101_v60 }
 0x12a   :  { %v109_v0 = vsub.f32 1.5, %v108_v61  ;;  %v117_v1 = vsub.f32 0.0, %v104_v63 }
 0x12c   :  { %v110_v2 = vmul.f32 %v192_v53, %v109_v0  ;;  %v126_v6 = vmul.f32 %v125_v3, %v117_v1 }
 0x12e   :  { %v111_v4 = vmul.f32 %v110_v2, %v92_v46  ;;  %v128_v11 = vmul.f32 1.442695, %v126_v6 }
 0x130   :  { %v113_v8 = vsel %vm112_vm7, %v92_v46, %v111_v4  ;;  %193 = vpow2.f32 %v128_v11 }
 0x131   :  { %v116_v9 = vsel %vm114_vm8, %v115_v5, %v113_v8 }
 0x132   :  { %v118_v10 = vsub.f32 0.0, %v116_v9 }
 0x134   :  { %v127_v12 = vmul.f32 %v125_v3, %v118_v10 }
 0x136   :  { %v130_v13 = vmul.f32 1.442695, %v127_v12  ;;  %v194_v14 = vpop.eup %193 }
 0x138   :  { %195 = vpow2.f32 %v130_v13 }
 0x13e   :  { %v196_v15 = vpop.eup %195 }
 0x13f   :  { %v141_v16 = vsel %vm43_vm0, %v196_v15, %v194_v14 }
 0x140   :  { %v143_v17 = vsel %vm137_vm9, 0.0, %v141_v16 }
 0x141   :  { %145 = vst.msk [vmem:[#allocation6] sm:$0x3] %vm144_vm10, %v143_v17 }
 0x142   :  { %168 = dma.vmem_to_hbm [thread:$0]  %s164_s14, 32, %s166_s17, [#allocation5]  }
 0x143   :  { %247 = dma.done.wait [#allocation5], 32  }
 0x144   :  { %248 = vsyncadd [#allocation5], 4294967264 }
 0x145   :  { %173 = vsyncpa [#allocation4], 1 }
 0x146   :  { %174 = vsyncpa [#allocation5], 1 }

</bundles_post_ra>
